<compile_context>
chip_gen: v5e
topology: v5e:2x2
jax: 0.10.0
libtpu: 0.0.40
codegen_flags: <defaults>
</compile_context>

<pallas_src>
import functools

import jax
import jax.numpy as jnp
from jax import lax
from jax.experimental import pallas as pl
from jax.experimental.pallas import tpu as pltpu


def _vmem_capacity_bytes():
    """Physical VMEM of the local TPU; conservative (v7x) fallback."""
    try:
        cap = int(pltpu.get_tpu_info().vmem_capacity_bytes)
        if cap > 0:
            return cap
    except Exception:
        pass
    return 64 << 20  # v7x per-TC physical VMEM (the smallest of the targets)


# ---------------------------------------------------------------------------
# Packed kernel: each row viewed as (R, 128); block (1, TR, 128); grid (N, KT).
# ---------------------------------------------------------------------------
def _dice_packed_kernel(x_ref, t_ref, inter_ref, denom_ref, *, R, TR):
    k = pl.program_id(1)
    last = pl.num_programs(1) - 1

    @pl.when(k == 0)
    def _():
        inter_ref[...] = jnp.zeros_like(inter_ref)
        denom_ref[...] = jnp.zeros_like(denom_ref)

    x = x_ref[0].astype(jnp.float32)   # (TR, 128); cast happens in-kernel
    t = t_ref[0].astype(jnp.float32)

    def _accumulate(xv, tv):
        # (TR, 128) -> (TR//8, 8, 128) is a pure view of the native (8, 128)
        # tiling; the axis-0 sums are plain vreg adds on the VPU (no XLU).
        xr = xv.reshape(TR // 8, 8, 128)
        tr = tv.reshape(TR // 8, 8, 128)
        inter_ref[...] += jnp.sum(xr * tr, axis=0, keepdims=True)
        denom_ref[...] += jnp.sum(xr + tr, axis=0, keepdims=True)

    if R % TR == 0:
        _accumulate(x, t)
    else:
        # Only the final reduction step touches a ragged edge block (Pallas
        # pads it with unspecified data); gate the row mask with pl.when so
        # steady-state steps stay pure streaming adds.
        @pl.when(k != last)
        def _():
            _accumulate(x, t)

        @pl.when(k == last)
        def _():
            row = lax.broadcasted_iota(jnp.int32, (TR, 128), 0)
            valid = row < (R - k * TR)
            _accumulate(jnp.where(valid, x, 0.0), jnp.where(valid, t, 0.0))


def _dice_sums_packed(x3, t3):
    """x3, t3: (N, R, 128) row-packed views. Returns two (N, 8, 128) partial
    sums: sum(x*t) and sum(x + t), accumulated in f32."""
    N, R, _ = x3.shape

    itemsize = max(jnp.dtype(x3.dtype).itemsize, jnp.dtype(t3.dtype).itemsize)
    vmem_cap = _vmem_capacity_bytes()
    # Total input double-buffering budget: <= 16 MiB and <= 1/4 of physical
    # VMEM.  Per-step per-input block = budget / (2 inputs * 2 buffers).
    buf_budget = min(16 << 20, vmem_cap // 4)
    block_budget = buf_budget // 4
    tr_cap = max(8, (block_budget // (128 * itemsize)) // 8 * 8)
    TR = min(tr_cap, (R // 8) * 8)          # TR multiple of 8, TR <= R
    KT = pl.cdiv(R, TR)

    kernel = functools.partial(_dice_packed_kernel, R=R, TR=TR)
    in_spec = pl.BlockSpec((1, TR, 128), lambda n, k: (n, k, 0))
    acc_spec = pl.BlockSpec((1, 8, 128), lambda n, k: (n, 0, 0))
    acc_shape = jax.ShapeDtypeStruct((N, 8, 128), jnp.float32)

    in_buf_bytes = 2 * TR * 128 * (
        jnp.dtype(x3.dtype).itemsize + jnp.dtype(t3.dtype).itemsize)
    vmem_limit = int(min(vmem_cap, max(16 << 20, in_buf_bytes + (4 << 20))))

    return pl.pallas_call(
        kernel,
        out_shape=[acc_shape, acc_shape],
        grid_spec=pltpu.PrefetchScalarGridSpec(
            num_scalar_prefetch=0,
            grid=(N, KT),
            in_specs=[in_spec, in_spec],
            out_specs=[acc_spec, acc_spec],
        ),
        compiler_params=pltpu.CompilerParams(
            dimension_semantics=("parallel", "arbitrary"),
            vmem_limit_bytes=vmem_limit,
        ),
    )(x3, t3)


# ---------------------------------------------------------------------------
# Public wrapper: BinaryDiceLoss.forward
# ---------------------------------------------------------------------------
def binary_dice_loss(inputs, targets):
    """inputs/targets: arrays of identical shape (N, ...). Returns scalar f32."""
    assert inputs.shape == targets.shape
    N = inputs.shape[0]
    x = jnp.reshape(inputs, (N, -1))     # native dtype; f32 cast happens in-kernel
    t = jnp.reshape(targets, (N, -1))
    D = x.shape[1]
    R = D // 128                          # number of full 128-lane rows
    main_D = R * 128
    tail_D = D - main_D

    if R >= 8:
        xm = x if tail_D == 0 else x[:, :main_D]
        tm = t if tail_D == 0 else t[:, :main_D]
        inter_acc, denom_acc = _dice_sums_packed(
            xm.reshape(N, R, 128), tm.reshape(N, R, 128))
        inter = inter_acc.reshape(N, -1).sum(axis=1)
        denom = denom_acc.reshape(N, -1).sum(axis=1)
        if tail_D:
            # < 128 leftover elements per row: negligible work, plain jnp.
            xt = x[:, main_D:].astype(jnp.float32)
            tt = t[:, main_D:].astype(jnp.float32)
            inter = inter + (xt * tt).sum(axis=1)
            denom = denom + xt.sum(axis=1) + tt.sum(axis=1)
    else:
        # Tiny rows (< 1024 elements): not worth a kernel launch.
        xf = x.astype(jnp.float32)
        tf = t.astype(jnp.float32)
        inter = (xf * tf).sum(axis=1)
        denom = xf.sum(axis=1) + tf.sum(axis=1)

    smooth = jnp.float32(1.0)
    dice = (2.0 * inter + smooth) / (denom + smooth)
    return 1.0 - jnp.sum(dice) / jnp.float32(N)


def _reference(inputs, targets):
    N = targets.shape[0]
    smooth = 1.0
    xf = jnp.reshape(inputs, (N, -1)).astype(jnp.float32)
    tf = jnp.reshape(targets, (N, -1)).astype(jnp.float32)
    inter = (xf * tf).sum(1)
    dice = (2.0 * inter + smooth) / (xf.sum(1) + tf.sum(1) + smooth)
    return 1.0 - dice.sum() / N


if __name__ == "__main__":
    key = jax.random.PRNGKey(0)
    ks = jax.random.split(key, 6)

    # Primary check: NCHW (2, 4, 16, 16), f32 -> D = 1024, R = 8, single step.
    x = jax.nn.sigmoid(jax.random.normal(ks[0], (2, 4, 16, 16), dtype=jnp.float32))
    y = (jax.random.uniform(ks[1], (2, 4, 16, 16)) > 0.5).astype(jnp.float32)
    loss = binary_dice_loss(x, y)
    jax.block_until_ready(loss)
    ref = _reference(x, y)
    assert jnp.allclose(loss, ref, rtol=1e-5, atol=1e-5), (loss, ref)

    # Ragged-D check: (2, 3, 21, 21) -> D = 1323: packed main region (R = 10,
    # masked final reduction step) + 43-element jnp tail per row.
    x2 = jax.nn.sigmoid(jax.random.normal(ks[2], (2, 3, 21, 21), dtype=jnp.float32))
    y2 = (jax.random.uniform(ks[3], (2, 3, 21, 21)) > 0.5).astype(jnp.float32)
    loss2 = binary_dice_loss(x2, y2)
    jax.block_until_ready(loss2)
    ref2 = _reference(x2, y2)
    assert jnp.allclose(loss2, ref2, rtol=1e-5, atol=1e-5), (loss2, ref2)

    # bf16 check, D % 128 == 0 but D % 1024 != 0: (2, 4, 16, 24) -> D = 1536.
    x3 = jax.nn.sigmoid(
        jax.random.normal(ks[4], (2, 4, 16, 24), dtype=jnp.float32)
    ).astype(jnp.bfloat16)
    y3 = (jax.random.uniform(ks[5], (2, 4, 16, 24)) > 0.5).astype(jnp.bfloat16)
    loss3 = binary_dice_loss(x3, y3)
    jax.block_until_ready(loss3)
    ref3 = _reference(x3, y3)
    assert jnp.allclose(loss3, ref3, rtol=1e-4, atol=1e-4), (loss3, ref3)

    print("KERNEL_OK")
</pallas_src>

<mosaic_0001>
module attributes {stable_mosaic.version = 11 : i64} {
  func.func @_dice_packed_kernel(%arg0: i32, %arg1: i32, %arg2: memref<1x8x128xf32, #tpu.memory_space<vmem>>, %arg3: memref<1x8x128xf32, #tpu.memory_space<vmem>>, %arg4: memref<1x8x128xf32, #tpu.memory_space<vmem>>, %arg5: memref<1x8x128xf32, #tpu.memory_space<vmem>>) attributes {dimension_semantics = [#tpu.dimension_semantics<parallel>, #tpu.dimension_semantics<arbitrary>], iteration_bounds = array<i64: 2, 1>, scalar_prefetch = 0 : i64, scratch_operands = 0 : i64, tpu.core_type = #tpu.core_type<tc>, window_params = [{transform_indices = @transform_0, window_bounds = array<i64: 1, 8, 128>}, {transform_indices = @transform_1, window_bounds = array<i64: 1, 8, 128>}, {transform_indices = @transform_2, window_bounds = array<i64: 1, 8, 128>}, {transform_indices = @transform_3, window_bounds = array<i64: 1, 8, 128>}]} {
    %c0_i32 = arith.constant 0 : i32
    %0 = arith.cmpi eq, %arg1, %c0_i32 : i32
    %1 = arith.extui %0 : i1 to i32
    %c0_i32_0 = arith.constant 0 : i32
    %2 = arith.cmpi ne, %1, %c0_i32_0 : i32
    scf.if %2 {
      %cst_19 = arith.constant 0.000000e+00 : f32
      %21 = vector.broadcast %cst_19 : f32 to vector<1x8x128xf32>
      %c0_20 = arith.constant 0 : index
      %c0_21 = arith.constant 0 : index
      %c0_22 = arith.constant 0 : index
      %22 = vector.load %arg4[%c0_20, %c0_21, %c0_22] : memref<1x8x128xf32, #tpu.memory_space<vmem>>, vector<1x8x128xf32>
      tpu.vector_store %arg4[%c0_20, %c0_21, %c0_22], %21 {strides = array<i32>} : memref<1x8x128xf32, #tpu.memory_space<vmem>>, vector<1x8x128xf32>,
      %cst_23 = arith.constant 0.000000e+00 : f32
      %23 = vector.broadcast %cst_23 : f32 to vector<1x8x128xf32>
      %c0_24 = arith.constant 0 : index
      %c0_25 = arith.constant 0 : index
      %c0_26 = arith.constant 0 : index
      %24 = vector.load %arg5[%c0_24, %c0_25, %c0_26] : memref<1x8x128xf32, #tpu.memory_space<vmem>>, vector<1x8x128xf32>
      tpu.vector_store %arg5[%c0_24, %c0_25, %c0_26], %23 {strides = array<i32>} : memref<1x8x128xf32, #tpu.memory_space<vmem>>, vector<1x8x128xf32>,
    } else {
    }
    %c0 = arith.constant 0 : index
    %c0_1 = arith.constant 0 : index
    %c0_2 = arith.constant 0 : index
    %3 = vector.load %arg2[%c0, %c0_1, %c0_2] : memref<1x8x128xf32, #tpu.memory_space<vmem>>, vector<1x8x128xf32>
    %4 = vector.shape_cast %3 : vector<1x8x128xf32> to vector<8x128xf32>
    %c0_3 = arith.constant 0 : index
    %c0_4 = arith.constant 0 : index
    %c0_5 = arith.constant 0 : index
    %5 = vector.load %arg3[%c0_3, %c0_4, %c0_5] : memref<1x8x128xf32, #tpu.memory_space<vmem>>, vector<1x8x128xf32>
    %6 = vector.shape_cast %5 : vector<1x8x128xf32> to vector<8x128xf32>
    %7 = vector.shape_cast %4 : vector<8x128xf32> to vector<1x8x128xf32>
    %8 = vector.shape_cast %6 : vector<8x128xf32> to vector<1x8x128xf32>
    %c0_6 = arith.constant 0 : index
    %c0_7 = arith.constant 0 : index
    %c0_8 = arith.constant 0 : index
    %9 = vector.load %arg4[%c0_6, %c0_7, %c0_8] : memref<1x8x128xf32, #tpu.memory_space<vmem>>, vector<1x8x128xf32>
    %10 = arith.mulf %7, %8 : vector<1x8x128xf32>
    %cst = arith.constant dense<0.000000e+00> : vector<8x128xf32>
    %11 = vector.multi_reduction <add>, %10, %cst [0] : vector<1x8x128xf32> to vector<8x128xf32>
    %12 = vector.shape_cast %11 : vector<8x128xf32> to vector<1x8x128xf32>
    %13 = arith.addf %9, %12 : vector<1x8x128xf32>
    %c0_9 = arith.constant 0 : index
    %c0_10 = arith.constant 0 : index
    %c0_11 = arith.constant 0 : index
    %14 = vector.load %arg4[%c0_9, %c0_10, %c0_11] : memref<1x8x128xf32, #tpu.memory_space<vmem>>, vector<1x8x128xf32>
    tpu.vector_store %arg4[%c0_9, %c0_10, %c0_11], %13 {strides = array<i32>} : memref<1x8x128xf32, #tpu.memory_space<vmem>>, vector<1x8x128xf32>,
    %c0_12 = arith.constant 0 : index
    %c0_13 = arith.constant 0 : index
    %c0_14 = arith.constant 0 : index
    %15 = vector.load %arg5[%c0_12, %c0_13, %c0_14] : memref<1x8x128xf32, #tpu.memory_space<vmem>>, vector<1x8x128xf32>
    %16 = arith.addf %7, %8 : vector<1x8x128xf32>
    %cst_15 = arith.constant dense<0.000000e+00> : vector<8x128xf32>
    %17 = vector.multi_reduction <add>, %16, %cst_15 [0] : vector<1x8x128xf32> to vector<8x128xf32>
    %18 = vector.shape_cast %17 : vector<8x128xf32> to vector<1x8x128xf32>
    %19 = arith.addf %15, %18 : vector<1x8x128xf32>
    %c0_16 = arith.constant 0 : index
    %c0_17 = arith.constant 0 : index
    %c0_18 = arith.constant 0 : index
    %20 = vector.load %arg5[%c0_16, %c0_17, %c0_18] : memref<1x8x128xf32, #tpu.memory_space<vmem>>, vector<1x8x128xf32>
    tpu.vector_store %arg5[%c0_16, %c0_17, %c0_18], %19 {strides = array<i32>} : memref<1x8x128xf32, #tpu.memory_space<vmem>>, vector<1x8x128xf32>,
    return
  }
  func.func @transform_0(%arg0: i32, %arg1: i32) -> (i32, i32, i32) {
    %c0_i32 = arith.constant 0 : i32
    %c0_i32_0 = arith.constant 0 : i32
    return %arg0, %arg1, %c0_i32 : i32, i32, i32
  }
  func.func @transform_1(%arg0: i32, %arg1: i32) -> (i32, i32, i32) {
    %c0_i32 = arith.constant 0 : i32
    %c0_i32_0 = arith.constant 0 : i32
    return %arg0, %arg1, %c0_i32 : i32, i32, i32
  }
  func.func @transform_2(%arg0: i32, %arg1: i32) -> (i32, i32, i32) {
    %c0_i32 = arith.constant 0 : i32
    %c0_i32_0 = arith.constant 0 : i32
    %c0_i32_1 = arith.constant 0 : i32
    return %arg0, %c0_i32, %c0_i32_0 : i32, i32, i32
  }
  func.func @transform_3(%arg0: i32, %arg1: i32) -> (i32, i32, i32) {
    %c0_i32 = arith.constant 0 : i32
    %c0_i32_0 = arith.constant 0 : i32
    %c0_i32_1 = arith.constant 0 : i32
    return %arg0, %c0_i32, %c0_i32_0 : i32, i32, i32
  }
}

</mosaic_0001>

<bundles_post_ra>
// kernel: tpu_custom_call.1
= control target key start
LH: loop header
LB: loop body
LE: loop exit
PB: predicated region body
PF: predicated region fallthrough
CT: control target
= control target key end

     0   :  { %9 = vsyncpa [#allocation3], 0  ;;  %s891_s0 = inlined_call_operand.hbm [shape: f32[2,8,128], index: 0, kind: input, shape index: {}]   ;;  %s892_s1 = inlined_call_operand.hbm [shape: f32[2,8,128], index: 1, kind: input, shape index: {}]   ;;  %s893_s2 = inlined_call_operand.hbm [shape: f32[2,8,128], index: 2, kind: output, shape index: {0}]   ;;  %s894_s3 = inlined_call_operand.hbm [shape: f32[2,8,128], index: 3, kind: output, shape index: {1}]  }
   0x1   :  { %11 = vsyncpa [#allocation3 + $0x1], 0 }
   0x2   :  { %12 = vsyncpa [#allocation6], 0 }
   0x3   :  { %14 = vsyncpa [#allocation6 + $0x1], 0 }
   0x4   :  { %15 = vsyncpa [#allocation4], 0 }
   0x5   :  { %17 = vsyncpa [#allocation4 + $0x1], 0 }
   0x6   :  { %18 = vsyncpa [#allocation9], 0 }
   0x7   :  { %20 = vsyncpa [#allocation9 + $0x1], 0  ;;  %s737_s12 = smov 0   ;;  %s739_s13 = smov 0  }
   0x8   :  { %s741_s14 = smov 0   ;;  %s743_s15 = smov 0  }
   0x9   :  { %s745_s16 = smov 0   ;;  %s747_s17 = smov 0  }
   0xa LB: > { %s445_s18 = sadd.s32 4294967295, %s715_s17   ;;  %s446_s19 = sadd.s32 4294967294, %s715_s17   ;;  %s715_s17 = sphi %s747_s17, %s26_s17   ;;  %s711_s16 = sphi %s745_s16, %s903_s16   ;;  %s707_s15 = sphi %s743_s15, %s902_s15   ;;  %s703_s14 = sphi %s741_s14, %s901_s14   ;;  %s699_s13 = sphi %s739_s13, %s900_s13   ;;  %s695_s12 = sphi %s737_s12, %s899_s12  }
   0xb   : > { %s38_s20 = sadd.s32 1, %s711_s16  ;;  %s47_s21 = sadd.s32 1, %s703_s14 }
   0xc   : > { %p40_p0 = scmp.ge.s32.totalorder %s38_s20, 2  ;;  %p54_p1 = scmp.ne.s32.totalorder %s703_s14, %s699_s13 }
   0xd   : > { %p55_p2 = scmp.eq.s32.totalorder %s715_s17, 0  ;;  %p60_p3 = scmp.ne.s32.totalorder %s699_s13, %s695_s12 }
   0xe   : > { %s905_s20 = smov (%p40_p0, %s38_s20), 0  ;;  %p61_p5 = scmp.eq.s32.totalorder %s445_s18, 0 }
   0xf   : > { %p778_p4 = por %p55_p2, %p54_p1  ;;  %s42_s23 = ssub.s32 %s711_s16, %s905_s20 }
  0x10   : > { %p112_p6 = scmp.eq.s32.totalorder %s445_s18, 1  ;;  %p45_p7 = scmp.eq.s32.totalorder %s42_s23, 0 }
  0x11   : > { %p784_p8 = por %p61_p5, %p60_p3  ;;  %p118_p10 = scmp.eq.s32.totalorder %s446_s19, 1 }
  0x12   : > { %p788_p9 = por %p112_p6, %p54_p1  ;;  %p448_p12 = scmp.ge.s32.totalorder %s715_s17, 2 }
  0x13   : > { %s793_s26 = scalar_select %p45_p7, %s703_s14, %s47_s21  }
  0x14   : > { %p795_p11 = por %p118_p10, %p60_p3  ;;  %p486_p13 = scmp.lt.s32.totalorder %s715_s17, 2 }
  0x15   : > { %s164_s28 = sand.u32 1, %s703_s14   ;;  %s450_s30 = sshll.u32 %s711_s16, 3 }
  0x16   : > { %s449_s29 = sshll.u32 %s164_s28, 3  ;;  %s173_s6 = scalar_lea.hbm %s891_s0, %s450_s30 }
  0x17   : > { %s168_s7 = scalar_lea.vmem [#allocation2], %s449_s29  ;;  %s175_s9 = sshll.u32 %s173_s6, 4  ;;  %s176_s9 = int_to_ptr.hbm [resolvable:$true] %s175_s9 }
  0x18   : > { %s177_s8 = sshll.u32 %s168_s7, 4  ;;  %p473_p0 = pnand %p486_p13, %p778_p4  ;;  %s178_s8 = int_to_ptr.vmem [resolvable:$true] %s177_s8 }
  0x19   : > { %p453_p1 = scmp.ge.s32.totalorder %s715_s17, 1  ;;  %p202_p2 = scmp.lt.s32.totalorder %s715_s17, 3 }
  0x1a   : > { %s165_s10 = scalar_lea.sflag [#allocation3], %s164_s28  ;;  %s193_s19 = scalar_lea.hbm %s892_s1, %s450_s30 }
  0x1b   : > { %475 = dma.hbm_to_vmem [thread:$0]  (!%p473_p0), %s176_s9, 128, %s178_s8, %s165_s10  }
  0x1c   : > { %p203_p3 = pnand %p453_p1, %p202_p2  ;;  %s188_s21 = scalar_lea.vmem [#allocation5], %s449_s29 }
  0x1d   : > { %s197_s23 = sshll.u32 %s188_s21, 4  ;;  %s195_s4 = sshll.u32 %s193_s19, 4  ;;  %s198_s23 = int_to_ptr.vmem [resolvable:$true] %s197_s23  ;;  %s196_s4 = int_to_ptr.hbm [resolvable:$true] %s195_s4 }
  0x1e   : > { %s185_s5 = scalar_lea.sflag [#allocation6], %s164_s28  ;;  %206 = sbr.rel (%p203_p3) target bundleno = 67 (0x43), region = 28 }
  0x1f   : > { %478 = dma.hbm_to_vmem [thread:$0]  (!%p473_p0), %s196_s4, 128, %s198_s23, %s185_s5  }
  0x20   : > { %s814_s22 = sand.u32 (!%p203_p3), 1, %s699_s13  }
  0x21   : > { %s454_s6 = sshll.u32 (!%p203_p3), %s814_s22, 3  ;;  %s209_s7 = scalar_lea.sflag (!%p203_p3), [#allocation3], %s814_s22 }
  0x22   : > { %s212_s8 = scalar_lea.vmem (!%p203_p3), [#allocation2], %s454_s6 }
  0x23   : > { %678 = dma.done.wait (%p784_p8), %s209_s7, 128  }
  0x24   : > { %680 = vsyncadd (%p784_p8), %s209_s7, 4294967168  ;;  %s219_s29 = scalar_lea.sflag [#allocation6], %s814_s22  ;;  %s222_s28 = scalar_lea.vmem [#allocation5], %s454_s6 }
  0x25   : > { %682 = dma.done.wait (%p784_p8), %s219_s29, 128  }
  0x26   : > { %684 = vsyncadd (%p784_p8), %s219_s29, 4294967168  ;;  %s460_s30 = sshll.u32 %s707_s15, 3  ;;  %s248_s23 = scalar_lea.vmem [#allocation7], %s454_s6  ;;  %v262_v0 = vld [vmem:[%s212_s8] sm:$0xff]  ;;  %v263_v1 = vld [vmem:[%s222_s28] sm:$0xff] }
  0x27   : > { %s290_s11 = scalar_lea.hbm %s893_s2, %s460_s30  ;;  %s304_s21 = scalar_lea.hbm %s894_s3, %s460_s30  ;;  %v265_v2 = vmul.f32 %v263_v1, %v262_v0  ;;  %v270_v3 = vadd.f32 %v263_v1, %v262_v0 }
  0x28   : > { %s834_s4 = sshll.u32 %s248_s23, 4  ;;  %s294_s5 = sshll.u32 %s290_s11, 4  ;;  %s293_s4 = int_to_ptr.vmem [resolvable:$true] %s834_s4  ;;  %s295_s5 = int_to_ptr.hbm [resolvable:$true] %s294_s5 }
  0x29   : > { %s255_s15 = scalar_lea.vmem [#allocation8], %s454_s6  ;;  %s308_s7 = sshll.u32 %s304_s21, 4  ;;  %268 = vst [vmem:[%s248_s23] sm:$0xff] %v265_v2  ;;  %s840_s7 = int_to_ptr.hbm [resolvable:$true] %s308_s7 }
  0x2a   : > { %s836_s24 = sshll.u32 %s255_s15, 4  ;;  %273 = vst [vmem:[%s255_s15] sm:$0xff] %v270_v3  ;;  %s275_s29 = scalar_lea.sflag [#allocation4], %s814_s22  ;;  %s307_s24 = int_to_ptr.vmem [resolvable:$true] %s836_s24 }
  0x2b   : > { %s611_s30 = sshra.s32 %s295_s5, 4  ;;  %s617_s9 = scalar_lea.hbm %s893_s2, 16  ;;  %s612_s30 = int_to_ptr.hbm [resolvable:$true] %s611_s30 }
  0x2c   : > { %s613_s8 = scalar_lea.hbm %s612_s30, 8  ;;  %p618_p7 = scmp.lt.s32.totalorder %s612_s30, %s893_s2 }
  0x2d   : > { %p614_p4 = scmp.ne.s32.totalorder %s612_s30, %s613_s8  ;;  %p619_p8 = scmp.lt.s32.totalorder %s617_s9, %s613_s8 }
  0x2f   : > { %p615_p5 = pnand %p614_p4, %p788_p9  ;;  %p620_p10 = por %p619_p8, %p618_p7 }
  0x31   : > { %p616_p6 = pneg %p615_p5 }
  0x33   : > { %p621_p13 = pnand %p620_p10, %p616_p6 }
  0x35   : > { %624 = shalt.err (!%p621_p13)
}
  0x36   : > { %468 = dma.vmem_to_hbm [thread:$0]  (%p788_p9), %s293_s4, 128, %s295_s5, %s275_s29  }
  0x37   : > { %s280_s18 = scalar_lea.sflag [#allocation9], %s814_s22  ;;  %s639_s19 = sshra.s32 %s840_s7, 4  ;;  %s640_s19 = int_to_ptr.hbm [resolvable:$true] %s639_s19 }
  0x38   : > { %s641_s21 = scalar_lea.hbm %s640_s19, 8  ;;  %s645_s30 = scalar_lea.hbm %s894_s3, 16 }
  0x39   : > { %p642_p0 = scmp.ne.s32.totalorder %s640_s19, %s641_s21  ;;  %p646_p3 = scmp.lt.s32.totalorder %s640_s19, %s894_s3 }
  0x3a   : > { %p647_p4 = scmp.lt.s32.totalorder %s645_s30, %s641_s21 }
  0x3b   : > { %p643_p1 = pnand %p642_p0, %p788_p9 }
  0x3c   : > { %p648_p5 = por %p647_p4, %p646_p3 }
  0x3d   : > { %p644_p2 = pneg %p643_p1 }
  0x3f   : > { %p649_p6 = pnand %p648_p5, %p644_p2 }
  0x41   : > { %652 = shalt.err (!%p649_p6)
}
  0x42   : > { %469 = dma.vmem_to_hbm [thread:$0]  (%p788_p9), %s307_s24, 128, %s840_s7, %s280_s18  }
  0x43 PF: > { %s320_s22 = sand.u32 1, %s695_s12   ;;  %p480_p7 = pnand %p448_p12, %p795_p11 }
  0x44   : > { %s321_s4 = scalar_lea.sflag [#allocation4], %s320_s22 }
  0x45   : > { %p481_p8 = pneg %p480_p7 }
  0x47   : > { %686 = dma.done.wait (%p481_p8), %s321_s4, 128  }
  0x48   : > { %688 = vsyncadd (%p481_p8), %s321_s4, 4294967168  ;;  %s331_s5 = scalar_lea.sflag [#allocation9], %s320_s22 }
  0x49   : > { %690 = dma.done.wait (%p481_p8), %s331_s5, 128  }
  0x4a   : > { %692 = vsyncadd (%p481_p8), %s331_s5, 4294967168  ;;  %s26_s17 = sadd.s32 1, %s715_s17   ;;  %s899_s12 = smov %s699_s13 }
  0x4b   : > { %p23_p10 = scmp.ge.s32.totalorder %s26_s17, 4   ;;  %s900_s13 = smov %s703_s14 }
  0x4c   : > { %s901_s14 = smov %s793_s26  ;;  %s902_s15 = smov %s711_s16 }
  0x4d   : > { %s903_s16 = smov %s905_s20  ;;  %25 = sbr.rel (!%p23_p10) target bundleno = 10 (0xa), region = 107 }
  0x52   :  { %337 = vsyncpa [#allocation3], 1 }
  0x53   :  { %339 = vsyncpa [#allocation3 + $0x1], 1 }
  0x54   :  { %340 = vsyncpa [#allocation6], 1 }
  0x55   :  { %342 = vsyncpa [#allocation6 + $0x1], 1 }
  0x56   :  { %343 = vsyncpa [#allocation4], 1 }
  0x57   :  { %345 = vsyncpa [#allocation4 + $0x1], 1 }
  0x58   :  { %346 = vsyncpa [#allocation9], 1 }
  0x59   :  { %348 = vsyncpa [#allocation9 + $0x1], 1 }

</bundles_post_ra>
